<compile_context>
chip_gen: v7x
topology: tpu7x:2x2x1
jax: 0.10.0
libtpu: 0.0.40
codegen_flags: <defaults>
</compile_context>

<pallas_src>
import jax
import jax.numpy as jnp
from jax import lax
from jax.experimental import pallas as pl
from jax.experimental.pallas import tpu as pltpu

VOCAB = 16            # input_size (vocabulary)
EMBED = 128           # embedding_size
HIDDEN = 64           # hidden_size (bidirectional output width)
H = HIDDEN // 2       # per-direction LSTM hidden size (32)
DH = 2 * H            # both directions concatenated (64)
GATES = 8 * H         # 4 gates x 2 directions (256)
KDIM = EMBED + DH     # fused LHS width (192)


def bilstm_seq_kernel(tok_ref, emb_ref, w_ref, b_ref, hc0_ref, out_ref):
    """Runs the whole token sequence (repeated seq_len==1 bi-LSTM steps) in one call.

    tok_ref : (T,)             int32, SMEM  token ids
    emb_ref : (VOCAB, 1, E)    f32,  VMEM  embedding table (row gathered in-kernel)
    w_ref   : (E+2H, 8H)       f32,  VMEM  fused gate weights (loaded once, reused T times)
    b_ref   : (1, 8H)          f32,  VMEM  fused gate bias (b_ih + b_hh, both directions)
    hc0_ref : (1, 4H)          f32,  VMEM  [h_fwd | h_bwd | c_fwd | c_bwd] initial state
    out_ref : (T, 1, 4H)       f32,  VMEM  per-step [h_fwd | h_bwd | c_fwd | c_bwd]
    """
    w = w_ref[...]                                         # (192, 256) -- load once
    b = b_ref[...]                                         # (1, 256)
    hc0 = hc0_ref[...]                                     # (1, 128)
    h0 = hc0[:, :DH]                                       # (1, 64)  [h_fwd | h_bwd]
    c0 = hc0[:, DH:]                                       # (1, 64)  [c_fwd | c_bwd]
    T = out_ref.shape[0]

    def step(t, carry):
        h_prev, c_prev = carry                             # (1, 2H) each
        tok = tok_ref[t]                                   # scalar from SMEM
        x = emb_ref[tok]                                   # (1, E) embedding row
        lhs = jnp.concatenate([x, h_prev], axis=-1)        # (1, E+2H) = (1, 192)
        # single fused MXU pass: all 4 gates for both directions
        gates = jnp.dot(lhs, w, preferred_element_type=jnp.float32) + b   # (1, 256)
        # full-row EUP passes, then static lane slices (gate-major, direction-minor)
        sig = jax.nn.sigmoid(gates)
        tnh = jnp.tanh(gates)
        i_g = sig[:, 0 * DH:1 * DH]                        # (1, 64)  [i_fwd | i_bwd]
        f_g = sig[:, 1 * DH:2 * DH]
        g_g = tnh[:, 2 * DH:3 * DH]
        o_g = sig[:, 3 * DH:4 * DH]
        c_new = f_g * c_prev + i_g * g_g                   # (1, 2H)
        h_new = o_g * jnp.tanh(c_new)                      # (1, 2H)
        out_ref[t] = jnp.concatenate([h_new, c_new], axis=-1)   # lane-dense (1, 128) store
        return (h_new, c_new)

    lax.fori_loop(0, T, step, (h0, c0))


def prepare_params(emb_matrix, w_ih, w_hh, b_ih, b_hh):
    """One-time parameter re-layout (hoisted out of the per-call forward).

    Fused gate weight layout: columns [g*2H + d*H : g*2H + (d+1)*H] for gate g in
    (i, f, g, o), direction d in (fwd, bwd):
        rows [0:E]       <- W_ih[d, gate].T
        rows [E:E+H]     <- W_hh[fwd, gate].T   (zeros in the bwd columns)
        rows [E+H:E+2H]  <- W_hh[bwd, gate].T   (zeros in the fwd columns)
    so that  concat(x, h_fwd, h_bwd) @ W_packed + b_packed  yields all gates of both
    directions in one (1,192)@(192,256) matmul.
    """
    b = b_ih + b_hh                                        # (2, 4H)
    zeros = jnp.zeros((H, H), jnp.float32)
    col_blocks, bias_blocks = [], []
    for g in range(4):                                     # i, f, g, o
        for d in range(2):                                 # fwd, bwd
            wih_g = w_ih[d, g * H:(g + 1) * H, :].T        # (E, H)
            whh_g = w_hh[d, g * H:(g + 1) * H, :].T        # (H, H)
            if d == 0:
                col = jnp.concatenate([wih_g, whh_g, zeros], axis=0)
            else:
                col = jnp.concatenate([wih_g, zeros, whh_g], axis=0)
            col_blocks.append(col)                         # (E+2H, H)
            bias_blocks.append(b[d, g * H:(g + 1) * H])
    w_packed = jnp.concatenate(col_blocks, axis=1)         # (E+2H, 8H) = (192, 256)
    b_packed = jnp.concatenate(bias_blocks)[None, :]       # (1, 8H)    = (1, 256)
    emb3d = emb_matrix.reshape(VOCAB, 1, EMBED)            # leading-dim gatherable layout
    return emb3d, w_packed, b_packed


def _run_sequence(tokens, h0, c0, packed):
    emb3d, w_packed, b_packed = packed
    T = tokens.shape[0]
    # pack the carried state into one lane-dense (1, 128) row
    hc0 = jnp.concatenate([h0.reshape(1, DH), c0.reshape(1, DH)], axis=-1)

    out = pl.pallas_call(
        bilstm_seq_kernel,
        out_shape=jax.ShapeDtypeStruct((T, 1, 2 * DH), jnp.float32),
        in_specs=[
            pl.BlockSpec(memory_space=pltpu.MemorySpace.SMEM),   # tokens
            pl.BlockSpec(memory_space=pltpu.MemorySpace.VMEM),   # embedding table
            pl.BlockSpec(memory_space=pltpu.MemorySpace.VMEM),   # fused weights
            pl.BlockSpec(memory_space=pltpu.MemorySpace.VMEM),   # fused bias
            pl.BlockSpec(memory_space=pltpu.MemorySpace.VMEM),   # initial h/c
        ],
        out_specs=pl.BlockSpec(memory_space=pltpu.MemorySpace.VMEM),
    )(tokens.astype(jnp.int32), emb3d, w_packed, b_packed, hc0)

    outputs = out[:, :, :DH]                               # (T, 1, 2H) per-step outputs
    h_n = out[T - 1, 0, :DH].reshape(2, 1, H)              # (2, 1, H): fwd, bwd
    c_n = out[T - 1, 0, DH:].reshape(2, 1, H)
    return outputs, (h_n, c_n)


@jax.jit
def bilstm_encoder_sequence(tokens, h0, c0, packed):
    """Fused multi-step path: equivalent to calling forward() once per token while
    carrying hidden between calls (the way this encoder is used in the seq2seq loop)."""
    return _run_sequence(tokens, h0, c0, packed)


@jax.jit
def bilstm_encoder_forward(token, hidden, packed):
    """Mirrors BiLSTMEncoder.forward(input, hidden) for a single token.
    Returns (output (1,1,2H), (h_n (2,1,H), c_n (2,1,H)))."""
    h0, c0 = hidden
    tokens = jnp.asarray(token, jnp.int32).reshape(1)
    outputs, (h_n, c_n) = _run_sequence(tokens, h0, c0, packed)
    return outputs.reshape(1, 1, DH), (h_n, c_n)


def reference_forward_sequence(tokens, h0, c0, params):
    """Pure-JAX reference: iterate the PyTorch per-token forward (gate order i,f,g,o),
    carrying hidden between calls."""
    emb_matrix, w_ih, w_hh, b_ih, b_hh = params
    h, c = h0, c0                                          # (2, 1, H)
    outs = []
    for t in range(int(tokens.shape[0])):
        x = emb_matrix[tokens[t]].reshape(1, EMBED)
        hs, cs = [], []
        for d in range(2):
            gates = x @ w_ih[d].T + b_ih[d] + h[d] @ w_hh[d].T + b_hh[d]   # (1, 4H)
            i_g = jax.nn.sigmoid(gates[:, 0 * H:1 * H])
            f_g = jax.nn.sigmoid(gates[:, 1 * H:2 * H])
            g_g = jnp.tanh(gates[:, 2 * H:3 * H])
            o_g = jax.nn.sigmoid(gates[:, 3 * H:4 * H])
            c_new = f_g * c[d] + i_g * g_g
            h_new = o_g * jnp.tanh(c_new)
            hs.append(h_new)
            cs.append(c_new)
        h = jnp.stack(hs, axis=0)                          # (2, 1, H)
        c = jnp.stack(cs, axis=0)
        outs.append(jnp.concatenate(hs, axis=-1))          # (1, 2H)
    outputs = jnp.stack(outs, axis=0)                      # (T, 1, 2H)
    return outputs, (h, c)


if __name__ == "__main__":
    key = jax.random.PRNGKey(0)
    k_emb, k_wih, k_whh, k_bih, k_bhh, k_h, k_c, k_tok = jax.random.split(key, 8)

    # deterministic synthetic parameters (shapes from nn.Embedding / nn.LSTM __init__)
    emb_matrix = jax.random.normal(k_emb, (VOCAB, EMBED), jnp.float32) * 0.1
    w_ih = jax.random.normal(k_wih, (2, 4 * H, EMBED), jnp.float32) * 0.1
    w_hh = jax.random.normal(k_whh, (2, 4 * H, H), jnp.float32) * 0.1
    b_ih = jax.random.normal(k_bih, (2, 4 * H), jnp.float32) * 0.1
    b_hh = jax.random.normal(k_bhh, (2, 4 * H), jnp.float32) * 0.1
    params = (emb_matrix, w_ih, w_hh, b_ih, b_hh)

    # one-time re-layout (NOT inside the jitted forward)
    packed = prepare_params(*params)

    T = 8
    tokens = jax.random.randint(k_tok, (T,), 0, VOCAB, jnp.int32)
    # initHidden() would be zeros; use small random state to exercise the h/c path.
    h0 = jax.random.normal(k_h, (2, 1, H), jnp.float32) * 0.1
    c0 = jax.random.normal(k_c, (2, 1, H), jnp.float32) * 0.1

    # --- fused sequence path (weights loaded once, recurrence inside the kernel) ---
    outs, (h_n, c_n) = bilstm_encoder_sequence(tokens, h0, c0, packed)
    jax.block_until_ready((outs, h_n, c_n))

    outs_ref, (h_ref, c_ref) = reference_forward_sequence(tokens, h0, c0, params)
    assert outs.shape == (T, 1, HIDDEN)
    assert h_n.shape == (2, 1, H) and c_n.shape == (2, 1, H)
    assert jnp.allclose(outs, outs_ref, atol=1e-4, rtol=1e-4)
    assert jnp.allclose(h_n, h_ref, atol=1e-4, rtol=1e-4)
    assert jnp.allclose(c_n, c_ref, atol=1e-4, rtol=1e-4)

    # --- single-token path (exact PyTorch forward(input, hidden) signature) ---
    out1, (h1, c1) = bilstm_encoder_forward(tokens[0], (h0, c0), packed)
    jax.block_until_ready((out1, h1, c1))
    ref_out1, (ref_h1, ref_c1) = reference_forward_sequence(tokens[:1], h0, c0, params)
    assert out1.shape == (1, 1, HIDDEN)
    assert jnp.allclose(out1, ref_out1.reshape(1, 1, HIDDEN), atol=1e-4, rtol=1e-4)
    assert jnp.allclose(h1, ref_h1, atol=1e-4, rtol=1e-4)
    assert jnp.allclose(c1, ref_c1, atol=1e-4, rtol=1e-4)

    print("KERNEL_OK")
</pallas_src>

<mosaic_0001>
module attributes {stable_mosaic.version = 11 : i64} {
  func.func @bilstm_seq_kernel(%arg0: memref<8xi32, #tpu.memory_space<smem>>, %arg1: memref<16x1x128xf32, #tpu.memory_space<vmem>>, %arg2: memref<192x256xf32, #tpu.memory_space<vmem>>, %arg3: memref<1x256xf32, #tpu.memory_space<vmem>>, %arg4: memref<1x128xf32, #tpu.memory_space<vmem>>, %arg5: memref<8x1x128xf32, #tpu.memory_space<vmem>>) attributes {dimension_semantics = [], scalar_prefetch = 0 : i64, scratch_operands = 0 : i64, tpu.core_type = #tpu.core_type<tc>} {
    %c0 = arith.constant 0 : index
    %c0_0 = arith.constant 0 : index
    %0 = vector.load %arg2[%c0, %c0_0] : memref<192x256xf32, #tpu.memory_space<vmem>>, vector<192x256xf32>
    %c0_1 = arith.constant 0 : index
    %c0_2 = arith.constant 0 : index
    %1 = vector.load %arg3[%c0_1, %c0_2] : memref<1x256xf32, #tpu.memory_space<vmem>>, vector<1x256xf32>
    %c0_3 = arith.constant 0 : index
    %c0_4 = arith.constant 0 : index
    %2 = vector.load %arg4[%c0_3, %c0_4] : memref<1x128xf32, #tpu.memory_space<vmem>>, vector<1x128xf32>
    %3 = vector.extract_strided_slice %2 {offsets = [0, 0], sizes = [1, 64], strides = [1, 1]} : vector<1x128xf32> to vector<1x64xf32>
    %4 = vector.extract_strided_slice %2 {offsets = [0, 64], sizes = [1, 64], strides = [1, 1]} : vector<1x128xf32> to vector<1x64xf32>
    %c0_i32 = arith.constant 0 : i32
    %c8_i32 = arith.constant 8 : i32
    %5 = arith.addi %c0_i32, %c8_i32 : i32
    %c1_i32 = arith.constant 1 : i32
    %6:2 = scf.for %arg6 = %c0_i32 to %5 step %c1_i32 iter_args(%arg7 = %3, %arg8 = %4) -> (vector<1x64xf32>, vector<1x64xf32>)  : i32 {
      %7 = arith.index_cast %arg6 : i32 to index
      %8 = memref.load %arg0[%7] : memref<8xi32, #tpu.memory_space<smem>>
      %9 = arith.index_cast %8 : i32 to index
      %c0_6 = arith.constant 0 : index
      %c0_7 = arith.constant 0 : index
      %10 = vector.load %arg1[%9, %c0_6, %c0_7] : memref<16x1x128xf32, #tpu.memory_space<vmem>>, vector<1x1x128xf32>
      %11 = vector.shape_cast %10 : vector<1x1x128xf32> to vector<1x128xf32>
      %12 = tpu.concatenate %11, %arg7 in 1 : vector<1x128xf32>, vector<1x64xf32> -> vector<1x192xf32>
      %cst = arith.constant dense<0.000000e+00> : vector<1x256xf32>
      %13 = tpu.matmul %12, %0, %cst {dimension_numbers = #tpu.dot_dimension_numbers<[1], [0], [0], [1], [0, 0, 1, 1], [], []>} : vector<1x192xf32>, vector<192x256xf32>, vector<1x256xf32> -> vector<1x256xf32>
      %14 = arith.addf %13, %1 : vector<1x256xf32>
      %15 = arith.negf %14 : vector<1x256xf32>
      %16 = math.exp %15 : vector<1x256xf32>
      %cst_8 = arith.constant 1.000000e+00 : f32
      %17 = vector.broadcast %cst_8 : f32 to vector<1x256xf32>
      %18 = arith.addf %17, %16 : vector<1x256xf32>
      %19 = arith.divf %17, %18 : vector<1x256xf32>
      %20 = math.tanh %14 : vector<1x256xf32>
      %21 = vector.extract_strided_slice %19 {offsets = [0, 0], sizes = [1, 64], strides = [1, 1]} : vector<1x256xf32> to vector<1x64xf32>
      %22 = vector.extract_strided_slice %19 {offsets = [0, 64], sizes = [1, 64], strides = [1, 1]} : vector<1x256xf32> to vector<1x64xf32>
      %23 = vector.extract_strided_slice %20 {offsets = [0, 128], sizes = [1, 64], strides = [1, 1]} : vector<1x256xf32> to vector<1x64xf32>
      %24 = vector.extract_strided_slice %19 {offsets = [0, 192], sizes = [1, 64], strides = [1, 1]} : vector<1x256xf32> to vector<1x64xf32>
      %25 = arith.mulf %22, %arg8 : vector<1x64xf32>
      %26 = arith.mulf %21, %23 : vector<1x64xf32>
      %27 = arith.addf %25, %26 : vector<1x64xf32>
      %28 = math.tanh %27 : vector<1x64xf32>
      %29 = arith.mulf %24, %28 : vector<1x64xf32>
      %30 = tpu.concatenate %29, %27 in 1 : vector<1x64xf32>, vector<1x64xf32> -> vector<1x128xf32>
      %31 = arith.index_cast %arg6 : i32 to index
      %c0_9 = arith.constant 0 : index
      %c0_10 = arith.constant 0 : index
      %32 = vector.load %arg5[%31, %c0_9, %c0_10] : memref<8x1x128xf32, #tpu.memory_space<vmem>>, vector<1x1x128xf32>
      %33 = vector.shape_cast %32 : vector<1x1x128xf32> to vector<1x128xf32>
      %34 = vector.shape_cast %30 : vector<1x128xf32> to vector<1x1x128xf32>
      tpu.vector_store %arg5[%31, %c0_9, %c0_10], %34 {strides = array<i32>} : memref<8x1x128xf32, #tpu.memory_space<vmem>>, vector<1x1x128xf32>,
      scf.yield %29, %27 : vector<1x64xf32>, vector<1x64xf32>
    }
    %c8_i32_5 = arith.constant 8 : i32
    return
  }
}

</mosaic_0001>

<bundles_post_ra>
// kernel: squeeze.3
= control target key start
LH: loop header
LB: loop body
LE: loop exit
PB: predicated region body
PF: predicated region fallthrough
CT: control target
= control target key end

     0   :  { %s85_s0 = inlined_call_operand.vmem [shape: f32[64], index: 0, kind: input, shape index: {}]   ;;  %s86_s1 = inlined_call_operand.hbm [shape: f32[2,1,32], index: 1, kind: output, shape index: {}]  }
   0x1   :  { %v5_v0 = vld [vmem:[%s85_s0] sm:$0x1] }
   0x2   :  { %2 = vsyncpa [#allocation1], 0  ;;  %6 = vst [vmem:[#allocation3] sm:$0x1] %v5_v0  ;;  %vm8_vm0 = vcmask 261120   ;;  %s58_s0 = smov 96  }
   0x3   :  { %s59_s8 = smov [#allocation0]  }
   0x4   :  { %s26_s9 = sshll.u32 %s59_s8, 4  ;;  %s27_s9 = int_to_ptr.vmem [resolvable:$true] %s26_s9 }
   0x5   :  { %s34_s10 = scalar_lea.vmem %s27_s9, 32  ;;  %p39_p1 = scmp.lt.s32.totalorder %s27_s9, %s27_s9 }
   0x6   :  { %p35_p0 = scmp.ne.s32.totalorder %s27_s9, %s34_s10  ;;  %p40_p2 = scmp.lt.s32.totalorder %s34_s10, %s34_s10 }
   0x8   :  { %p41_p3 = por %p40_p2, %p39_p1 }
   0x9   :  { %v10_v1 = vld [vmem:[#allocation3] sm:$0x1]  }
   0xa   :  { %v7_v2 = vld [vmem:[#allocation3] sm:$0x1]   ;;  %11 = vrot.lane.b32.xlu0 %v10_v1, %s58_s0  ;;  %p42_p4 = pnand %p41_p3, %p35_p0 }
   0xb   :  { %9 = vst.msk [vmem:[#allocation2] sm:$0x1] %vm8_vm0, %v7_v2  }
  0x7c   :  { %v12_v3 = vpop.permute.xlu0 %11  }
  0x7d   :  { %15 = vst.msk [vmem:[#allocation2 + $0x1] sm:$0x1] %vm8_vm0, %v12_v3  }
  0x84   :  { %v19_v4 = vld [vmem:[#allocation2] sm:$0x3] }
  0x85   :  { %21 = vst [vmem:[#allocation0] sm:$0x3] %v19_v4 }
  0x86   :  { %45 = shalt.err (!%p42_p4)
}
  0x87   :  { %s46_s13 = scalar_lea.hbm %s86_s1, 32 }
  0x88   :  { %p47_p5 = scmp.ne.s32.totalorder %s86_s1, %s46_s13  ;;  %p50_p6 = scmp.lt.u32.totalorder %s46_s13, %s86_s1 }
  0x8a   :  { %p52_p7 = pnand %p50_p6, %p47_p5 }
  0x8c   :  { %55 = shalt.err (!%p52_p7)
}
  0x8d   :  { %29 = dma.vmem_to_hbm [thread:$0]  %s27_s9, 32, %s86_s1, [#allocation1]  }
  0x8e   :  { %56 = dma.done.wait [#allocation1], 32  }
  0x8f   :  { %57 = vsyncadd [#allocation1], 4294967264 }
  0x90   :  { %31 = vsyncpa [#allocation1], 1 }

// kernel: bilstm_encoder_sequence.1
= control target key start
LH: loop header
LB: loop body
LE: loop exit
PB: predicated region body
PF: predicated region fallthrough
CT: control target
= control target key end

     0   :  { %10 = vsyncpa [#allocation4], 0  ;;  %s658_s0 = inlined_call_operand.vmem [shape: s32[8], index: 0, kind: input, shape index: {}]   ;;  %s659_s1 = inlined_call_operand.vmem [shape: f32[16,1,128], index: 1, kind: input, shape index: {}]   ;;  %s660_s2 = inlined_call_operand.hbm [shape: f32[192,256], index: 2, kind: input, shape index: {}]   ;;  %s661_s3 = inlined_call_operand.vmem [shape: f32[1,256], index: 3, kind: input, shape index: {}]   ;;  %s662_s4 = inlined_call_operand.vmem [shape: f32[1,128], index: 4, kind: input, shape index: {}]   ;;  %s663_s5 = inlined_call_operand.vmem [shape: f32[8,1,128], index: 5, kind: output, shape index: {}]  }
   0x1   :  { %s18_s20 = sshll.u32 %s658_s0, 4  ;;  %s19_s20 = int_to_ptr.vmem [resolvable:$true] %s18_s20 }
   0x2   :  { %11 = vsyncpa [#allocation3], 0  ;;  %s351_s21 = scalar_lea.vmem %s19_s20, 16  ;;  %p356_p1 = scmp.lt.s32.totalorder %s19_s20, %s19_s20 }
   0x3   :  { %p352_p0 = scmp.ne.s32.totalorder %s19_s20, %s351_s21  ;;  %p357_p2 = scmp.lt.s32.totalorder %s351_s21, %s351_s21 }
   0x5   :  { %p358_p3 = por %p357_p2, %p356_p1 }
   0x7   :  { %p359_p4 = pnand %p358_p3, %p352_p0 }
   0x9   :  { %362 = shalt.err (!%p359_p4)
}
   0xa   :  { %s413_s22 = smov [#allocation2]   ;;  %s414_s23 = smov [#allocation5]  }
   0xb   :  { %21 = dma.vmem_to_smem %s19_s20, 16, %s413_s22, [#allocation4]  }
   0xc   :  { %s29_s24 = sshll.u32 %s414_s23, 4  ;;  %s363_s27 = scalar_lea.hbm %s660_s2, 6144  ;;  %s30_s24 = int_to_ptr.vmem [resolvable:$true] %s29_s24 }
   0xd   :  { %p364_p5 = scmp.ne.s32.totalorder %s660_s2, %s363_s27  ;;  %p367_p6 = scmp.lt.u32.totalorder %s363_s27, %s660_s2 }
   0xf   :  { %p369_p7 = pnand %p367_p6, %p364_p5 }
  0x11   :  { %372 = shalt.err (!%p369_p7)
}
  0x12   :  { %s373_s6 = scalar_lea.vmem %s30_s24, 6144  ;;  %p378_p9 = scmp.lt.s32.totalorder %s30_s24, %s30_s24 }
  0x13   :  { %p374_p8 = scmp.ne.s32.totalorder %s30_s24, %s373_s6  ;;  %p379_p10 = scmp.lt.s32.totalorder %s373_s6, %s373_s6 }
  0x15   :  { %p380_p11 = por %p379_p10, %p378_p9 }
  0x17   :  { %p381_p12 = pnand %p380_p11, %p374_p8 }
  0x19   :  { %384 = shalt.err (!%p381_p12)
}
  0x1a   :  { %s415_s7 = smov 256   ;;  %s416_s8 = smov 16  }
  0x1b   :  { %35 = dma.hbm_to_vmem [thread:$0]  %s660_s2, 6144, %s30_s24, [#allocation3], %s415_s7, %s415_s7, %s416_s8  }
  0x1c   :  { %397 = dma.done.wait [#allocation4], 16  }
  0x1d   :  { %398 = vsyncadd [#allocation4], 4294967280 }
  0x1e   :  { %399 = dma.done.wait [#allocation3], 6144  }
  0x1f   :  { %400 = vsyncadd [#allocation3], 4294961152 }
  0x20   :  { %46 = sfence }
  0x21   :  { %v464_v0 = vld [vmem:[#allocation5] sm:$0xff]  ;;  %v466_v1 = vld [vmem:[#allocation5 + $0x8] sm:$0xff]  ;;  %v468_v2 = vld [vmem:[#allocation5 + $0x10] sm:$0xff]  ;;  %v98_v18 = vlaneseq  ;;  %s417_s14 = smov 64   ;;  %s577_s15 = smov 0  }
  0x22   :  { %665 = vst [vmem:[#allocation8_spill] sm:$0xff] %v464_v0  ;;  %666 = vst [vmem:[#allocation9_spill] sm:$0xff] %v466_v1  ;;  %v470_v3 = vld [vmem:[#allocation5 + $0x18] sm:$0xff]  ;;  %v472_v4 = vld [vmem:[#allocation5 + $0x20] sm:$0xff] }
  0x23   :  { %v474_v5 = vld [vmem:[#allocation5 + $0x28] sm:$0xff]  ;;  %v476_v6 = vld [vmem:[#allocation5 + $0x30] sm:$0xff]  ;;  %v478_v7 = vld [vmem:[#allocation5 + $0x38] sm:$0xff]  ;;  %v524_v31 = vshrl.u32 %v98_v18, 7 }
  0x24   :  { %v480_v8 = vld [vmem:[#allocation5 + $0x40] sm:$0xff]  ;;  %v482_v9 = vld [vmem:[#allocation5 + $0x48] sm:$0xff]  ;;  %v484_v10 = vld [vmem:[#allocation5 + $0x50] sm:$0xff] }
  0x25   :  { %v486_v11 = vld [vmem:[#allocation5 + $0x58] sm:$0xff]  ;;  %v488_v12 = vld [vmem:[#allocation5 + $0x60] sm:$0xff]  ;;  %v490_v13 = vld [vmem:[#allocation5 + $0x68] sm:$0xff]  ;;  %v664_v44 = vsub.s32 0, %v524_v31 }
  0x26   :  { %v492_v14 = vld [vmem:[#allocation5 + $0x70] sm:$0xff]  ;;  %v494_v15 = vld [vmem:[#allocation5 + $0x78] sm:$0xff]  ;;  %v496_v16 = vld [vmem:[#allocation5 + $0x80] sm:$0xff] }
  0x27   :  { %v498_v17 = vld [vmem:[#allocation5 + $0x88] sm:$0xff]  ;;  %v500_v19 = vld [vmem:[#allocation5 + $0x90] sm:$0xff]  ;;  %v502_v20 = vld [vmem:[#allocation5 + $0x98] sm:$0xff] }
  0x28   :  { %v504_v21 = vld [vmem:[#allocation5 + $0xa0] sm:$0xff]  ;;  %v506_v22 = vld [vmem:[#allocation5 + $0xa8] sm:$0xff]  ;;  %v508_v23 = vld [vmem:[#allocation5 + $0xb0] sm:$0xff] }
  0x29   :  { %v510_v24 = vld [vmem:[#allocation5 + $0xb8] sm:$0xff]  ;;  %v512_v25 = vld [vmem:[#allocation5 + $0xc0] sm:$0xff]  ;;  %v514_v26 = vld [vmem:[#allocation5 + $0xc8] sm:$0xff] }
  0x2a   :  { %v516_v27 = vld [vmem:[#allocation5 + $0xd0] sm:$0xff]  ;;  %v518_v28 = vld [vmem:[#allocation5 + $0xd8] sm:$0xff]  ;;  %v520_v29 = vld [vmem:[#allocation5 + $0xe0] sm:$0xff] }
  0x2b   :  { %v522_v30 = vld [vmem:[#allocation5 + $0xe8] sm:$0xff]  ;;  %v526_v32 = vld [vmem:[#allocation5 + $0xf0] sm:$0xff]  ;;  %v528_v33 = vld [vmem:[#allocation5 + $0xf8] sm:$0xff] }
  0x2c   :  { %v530_v34 = vld [vmem:[#allocation5 + $0x100] sm:$0xff]  ;;  %v532_v35 = vld [vmem:[#allocation5 + $0x108] sm:$0xff]  ;;  %v534_v36 = vld [vmem:[#allocation5 + $0x110] sm:$0xff] }
  0x2d   :  { %v536_v37 = vld [vmem:[#allocation5 + $0x118] sm:$0xff]  ;;  %v538_v38 = vld [vmem:[#allocation5 + $0x120] sm:$0xff]  ;;  %v540_v39 = vld [vmem:[#allocation5 + $0x128] sm:$0xff] }
  0x2e   :  { %v542_v40 = vld [vmem:[#allocation5 + $0x130] sm:$0xff]  ;;  %v544_v41 = vld [vmem:[#allocation5 + $0x138] sm:$0xff]  ;;  %v546_v42 = vld [vmem:[#allocation5 + $0x140] sm:$0xff] }
  0x2f   :  { %v548_v43 = vld [vmem:[#allocation5 + $0x148] sm:$0xff]  ;;  %v551_v45 = vld [vmem:[#allocation5 + $0x150] sm:$0xff]  ;;  %v553_v46 = vld [vmem:[#allocation5 + $0x158] sm:$0xff] }
  0x30   :  { %v555_v47 = vld [vmem:[#allocation5 + $0x160] sm:$0xff]  ;;  %v557_v48 = vld [vmem:[#allocation5 + $0x168] sm:$0xff]  ;;  %v559_v49 = vld [vmem:[#allocation5 + $0x170] sm:$0xff] }
  0x31   :  { %v561_v50 = vld [vmem:[#allocation5 + $0x178] sm:$0xff]  ;;  %v566_v51 = vld [vmem:[%s661_s3] sm:$0x3] }
  0x32   :  { %v96_v52 = vld [vmem:[%s662_s4] sm:$0x1]  }
  0x33   :  { %v101_v53 = vrot.slane %v96_v52, %v664_v44 }
  0x35   :  { %102 = vrot.lane.b32.xlu0 %v101_v53, %s417_s14 }
  0xa7   :  { %v103_v54 = vpop.permute.xlu0 %102  }
  0xa8 LB: > { %v667_v1 = vld [vmem:[#allocation9_spill] sm:$0xff]  ;;  %v668_v0 = vld [vmem:[#allocation8_spill] sm:$0xff]  ;;  %v265_v57 = vpack.c.bf16 %v478_v7, %v474_v5  ;;  %v267_v58 = vpack.c.bf16 %v476_v6, %v472_v4  ;;  %v269_v59 = vpack.c.bf16 %v486_v11, %v482_v9  ;;  %vm127_vm0 = vcmask 523264   ;;  %s418_s3 = smov 64   ;;  %s113_s4 = sld [smem:[#allocation2 + %s411_s15]]  ;;  %s411_s15 = sphi %s577_s15, %s110_s15   ;;  %v407_v52 = vphi %v96_v52, %v230_v52   ;;  %v403_v54 = vphi %v103_v54, %v237_v54  }
  0xa9   : > { %v261_v55 = vpack.c.bf16 %v470_v3, %v667_v1  ;;  %v263_v56 = vpack.c.bf16 %v468_v2, %v668_v0  ;;  %v271_v60 = vpack.c.bf16 %v484_v10, %v480_v8  ;;  %v273_v61 = vpack.c.bf16 %v494_v15, %v490_v13  ;;  %258 = vmatprep.mubr.msk.f32.mxu0 %vm127_vm0, %v407_v52  ;;  %s233_s21 = scalar_lea.vmem %s663_s5, %s411_s15  ;;  %s110_s15 = sadd.s32 1, %s411_s15  }
  0xaa   : > { %216 = vrot.lane.b32.xlu0 %v403_v54, %s418_s3  ;;  %v275_v62 = vpack.c.bf16 %v492_v14, %v488_v12  ;;  %v277_v63 = vpack.c.bf16 %v502_v20, %v498_v17  ;;  %v279_v18 = vpack.c.bf16 %v500_v19, %v496_v16  ;;  %v281_v53 = vpack.c.bf16 %v510_v24, %v506_v22  ;;  %p107_p13 = scmp.ge.s32.totalorder %s110_s15, 8  }
  0xab   : > { %262 = vmatprep.subr.bf16.mxu0 %v261_v55  ;;  %v283_v52 = vpack.c.bf16 %v508_v23, %v504_v21  ;;  %v285_v54 = vpack.c.bf16 %v518_v28, %v514_v26  ;;  %v287_v55 = vpack.c.bf16 %v516_v27, %v512_v25  ;;  %v669_v44 = vsub.s32 0, %v524_v31 }
  0xac   : > { %264 = vmatpush1.bf16.msra.mxu0 %v263_v56  ;;  %v289_v56 = vpack.c.bf16 %v528_v33, %v522_v30 }
  0xad   : > { %266 = vmatprep.subr.bf16.mxu0 %v265_v57  ;;  %v291_v57 = vpack.c.bf16 %v526_v32, %v520_v29 }
  0xae   : > { %s114_s18 = scalar_lea.vmem %s659_s1, %s113_s4 }
  0xb0   : > { %268 = vmatpush1.bf16.msra.mxu0 %v267_v58  ;;  %v293_v58 = vpack.c.bf16 %v536_v37, %v532_v35 }
  0xb1   : > { %270 = vmatprep.subr.bf16.mxu0 %v269_v59  ;;  %v295_v59 = vpack.c.bf16 %v534_v36, %v530_v34 }
  0xb4   : > { %272 = vmatpush1.bf16.msra.mxu0 %v271_v60  ;;  %v297_v60 = vpack.c.bf16 %v544_v41, %v540_v39 }
  0xb5   : > { %274 = vmatprep.subr.bf16.mxu0 %v273_v61  ;;  %v299_v61 = vpack.c.bf16 %v542_v40, %v538_v38 }
  0xb8   : > { %276 = vmatpush1.bf16.msra.mxu0 %v275_v62  ;;  %v301_v62 = vpack.c.bf16 %v553_v46, %v548_v43 }
  0xb9   : > { %278 = vmatprep.subr.bf16.mxu0 %v277_v63  ;;  %v303_v63 = vpack.c.bf16 %v551_v45, %v546_v42 }
  0xbc   : > { %280 = vmatpush1.bf16.msra.mxu0 %v279_v18  ;;  %v305_v18 = vpack.c.bf16 %v561_v50, %v557_v48 }
  0xbd   : > { %282 = vmatprep.subr.bf16.mxu0 %v281_v53  ;;  %v307_v53 = vpack.c.bf16 %v559_v49, %v555_v47 }
  0xc0   : > { %284 = vmatpush1.bf16.msra.mxu0 %v283_v52  ;;  %v115_v52 = vld [vmem:[%s114_s18] sm:$0x1] }
  0xc1   : > { %286 = vmatprep.subr.bf16.mxu0 %v285_v54  ;;  %v120_v54 = vrot.slane %v566_v51, %v669_v44 }
  0xc4   : > { %288 = vmatpush1.bf16.msra.mxu0 %v287_v55 }
  0xc5   : > { %290 = vmatprep.subr.bf16.mxu0 %v289_v56 }
  0xc8   : > { %292 = vmatpush1.bf16.msra.mxu0 %v291_v57 }
  0xc9   : > { %294 = vmatprep.subr.bf16.mxu0 %v293_v58 }
  0xcc   : > { %296 = vmatpush1.bf16.msra.mxu0 %v295_v59  ;;  %v123_v59 = vsub.s32 1, %v524_v31 }
  0xcd   : > { %298 = vmatprep.subr.bf16.mxu0 %v297_v60 }
  0xce   : > { %v124_v60 = vrot.slane %v566_v51, %v123_v59 }
  0xd0   : > { %300 = vmatpush1.bf16.msra.mxu0 %v299_v61 }
  0xd1   : > { %302 = vmatprep.subr.bf16.mxu0 %v301_v62 }
  0xd4   : > { %304 = vmatpush1.bf16.msra.mxu0 %v303_v63 }
  0xd5   : > { %306 = vmatprep.subr.bf16.mxu0 %v305_v18 }
  0xd8   : > { %308 = vmatpush1.bf16.msra.mxu0 %v307_v53 }
  0xdb   : > { %196 = vmatmul.mubr.f32.vlgmr.msra.gmra.mrb[0].mxu0 %v115_v52 }
 0x1ae   : > { %v197_v55 = vpop.f32.mrb[0].mxu0 }
 0x1af   : > { %v198_v56 = vadd.f32 %v197_v55, %v120_v54  ;;  %v199_v57 = vpop.f32.mrb[1].mxu0  ;;  %v217_v55 = vpop.permute.xlu0 %216 }
 0x1b0   : > { %v200_v61 = vadd.f32 %v199_v57, %v124_v60 }
 0x1b1   : > { %v259_v58 = vmul.f32 -1.442695, %v198_v56 }
 0x1b2   : > { %v260_v44 = vmul.f32 -1.442695, %v200_v61 }
 0x1b3   : > { %339 = vpow2.f32 %v259_v58 }
 0x1b4   : > { %341 = vtanh.f32 %v200_v61 }
 0x1bd   : > { %v340_v62 = vpop.eup %339 }
 0x1be   : > { %v208_v63 = vadd.f32 1.0, %v340_v62  ;;  %v342_v18 = vpop.eup %341 }
 0x1c0   : > { %343 = vrcp.f32 %v208_v63 }
 0x1c1   : > { %345 = vpow2.f32 %v260_v44 }
 0x1ca   : > { %v344_v53 = vpop.eup %343 }
 0x1cb   : > { %v220_v52 = vmul.f32 %v344_v53, %v342_v18  ;;  %v346_v54 = vpop.eup %345  ;;  %v219_v58 = vmul.f32 %v344_v53, %v217_v55 }
 0x1cc   : > { %v209_v56 = vadd.f32 1.0, %v346_v54 }
 0x1cd   : > { %222 = vrot.lane.b32.xlu0 %v220_v52, %s418_s3 }
 0x1ce   : > { %347 = vrcp.f32 %v209_v56 }
 0x1d8   : > { %v348_v57 = vpop.eup %347 }
 0x23f   : > { %v223_v0 = vpop.permute.xlu0 %222 }
 0x240   : > { %v225_v1 = vadd.f32 %v223_v0, %v219_v58 }
 0x242   : > { %349 = vtanh.f32 %v225_v1 }
 0x24c   : > { %v350_v59 = vpop.eup %349 }
 0x24d   : > { %v227_v60 = vmul.f32 %v350_v59, %v348_v57 }
 0x24f   : > { %229 = vrot.lane.b32.xlu1 %v227_v60, %s418_s3 }
 0x253   : > { %236 = vrot.lane.b32.xlu1 %v225_v1, %s418_s3 }
 0x2bf   :  { %109 = sbr.rel (!%p107_p13) target bundleno = 168 (0xa8), region = 57 }
 0x2c1   : > { %v230_v52 = vpop.permute.xlu1 %229  }
 0x2c2   : > { %v232_v44 = vsel %vm127_vm0, %v230_v52, %v225_v1 }
 0x2c3   : > { %234 = vst [vmem:[%s233_s21] sm:$0x1] %v232_v44 }
 0x2c5   : > { %v237_v54 = vpop.permute.xlu1 %236  }
 0x2c6   :  { %243 = vsyncpa [#allocation3], 1 }
 0x2c7   :  { %244 = vsyncpa [#allocation4], 1 }

</bundles_post_ra>
